<compile_context>
chip_gen: v6e
topology: v6e:2x2x1
jax: 0.10.0
libtpu: 0.0.40
codegen_flags: <defaults>
</compile_context>

<pallas_src>
import functools
import math

import jax
import jax.numpy as jnp
from jax.experimental import pallas as pl
from jax.experimental.pallas import tpu as pltpu


# ------------------------------------------------------------------ tiling helper

def _tile(dim, pref, align):
    """Largest multiple of `align` that divides `dim` and is <= pref; else the full dim."""
    if dim <= pref:
        return dim
    t = (pref // align) * align
    while t >= align:
        if dim % t == 0:
            return t
        t -= align
    return dim


_BIG_VMEM = 48 * 1024 * 1024   # per perf review: safe on v7x (64 MiB phys), ample on v5e/v6e


# ------------------------------------------------------------------ kernels

def _linear_kernel(x_ref, w_ref, b_ref, o_ref, acc_ref, *, gelu):
    """Tiled matmul: grid (M/tm, N/tn, K/tk); bf16 inputs, f32 accumulate, bias (+GELU)."""
    @pl.when(pl.program_id(2) == 0)
    def _():
        acc_ref[...] = jnp.zeros(acc_ref.shape, acc_ref.dtype)

    acc_ref[...] += jnp.dot(x_ref[...], w_ref[...], preferred_element_type=jnp.float32)

    @pl.when(pl.program_id(2) == pl.num_programs(2) - 1)
    def _():
        h = acc_ref[...] + b_ref[...]
        if gelu:
            # TODO(synk): HF BertGeneration uses exact erf-GELU; tanh approximation is used
            # here for safe TPU lowering (numerically very close).
            h = 0.5 * h * (1.0 + jnp.tanh(0.7978845608028654 * (h + 0.044715 * h * h * h)))
        o_ref[...] = h.astype(o_ref.dtype)


def _linear_res_ln_kernel(x_ref, w_ref, b_ref, res_ref, g_ref, beta_ref, o_ref, acc_ref, *, eps):
    """Fused: (x @ w + b + residual) -> layernorm.  Grid (M/tm, K/tk); N = hidden, untiled."""
    @pl.when(pl.program_id(1) == 0)
    def _():
        acc_ref[...] = jnp.zeros(acc_ref.shape, acc_ref.dtype)

    acc_ref[...] += jnp.dot(x_ref[...], w_ref[...], preferred_element_type=jnp.float32)

    @pl.when(pl.program_id(1) == pl.num_programs(1) - 1)
    def _():
        h = acc_ref[...] + b_ref[...] + res_ref[...].astype(jnp.float32)
        mu = jnp.mean(h, axis=-1, keepdims=True)
        var = jnp.mean((h - mu) ** 2, axis=-1, keepdims=True)
        o_ref[...] = ((h - mu) * jax.lax.rsqrt(var + eps) * g_ref[...] + beta_ref[...]
                      ).astype(o_ref.dtype)


def _bcast_add_ln_kernel(a_ref, b_ref, g_ref, beta_ref, o_ref, *, eps):
    """LayerNorm(a + b) over last dim; b broadcasts over batch or sequence in-kernel."""
    h = a_ref[...].astype(jnp.float32) + b_ref[...].astype(jnp.float32)
    mu = jnp.mean(h, axis=-1, keepdims=True)
    var = jnp.mean((h - mu) ** 2, axis=-1, keepdims=True)
    o_ref[...] = ((h - mu) * jax.lax.rsqrt(var + eps) * g_ref[...] + beta_ref[...]
                  ).astype(o_ref.dtype)


def _mha_kernel(q_ref, k_ref, v_ref, mask_ref, o_ref, m_sc, l_sc, acc_sc, *, causal, kv_tile):
    """Flash-style attention for a group of heads: grid (BH/G, n_kv) with online softmax.

    Mask is built in-kernel: padding comes from the small [B,1,Skv] mask block,
    causality from broadcasted_iota.  1/sqrt(hd) is pre-folded into the q weights.
    """
    kvi = pl.program_id(1)

    @pl.when(kvi == 0)
    def _():
        m_sc[...] = jnp.full(m_sc.shape, -jnp.inf, m_sc.dtype)
        l_sc[...] = jnp.zeros(l_sc.shape, l_sc.dtype)
        acc_sc[...] = jnp.zeros(acc_sc.shape, acc_sc.dtype)

    # (G, Sq, hd) x (G, tkv, hd) -> (G, Sq, tkv), f32 scores.
    s = jnp.einsum("bqd,bkd->bqk", q_ref[...], k_ref[...],
                   preferred_element_type=jnp.float32)
    s = s + (mask_ref[...] - 1.0) * 1e9                      # padding (additive key) mask
    if causal:
        rows = jax.lax.broadcasted_iota(jnp.int32, s.shape, 1)
        cols = jax.lax.broadcasted_iota(jnp.int32, s.shape, 2) + kvi * kv_tile
        s = jnp.where(cols <= rows, s, -1e9)

    m_new = jnp.maximum(m_sc[...], jnp.max(s, axis=-1, keepdims=True))
    alpha = jnp.exp(m_sc[...] - m_new)
    p = jnp.exp(s - m_new)
    l_sc[...] = alpha * l_sc[...] + jnp.sum(p, axis=-1, keepdims=True)
    acc_sc[...] = alpha * acc_sc[...] + jnp.einsum(
        "bqk,bkd->bqd", p.astype(v_ref.dtype), v_ref[...],
        preferred_element_type=jnp.float32)
    m_sc[...] = m_new

    @pl.when(kvi == pl.num_programs(1) - 1)
    def _():
        o_ref[...] = (acc_sc[...] / l_sc[...]).astype(o_ref.dtype)


def _stacked_linear_kernel(x_ref, w_ref, b_ref, o_ref):
    """Per-layer O projection of the latent context: grid (n_layers,)."""
    o_ref[0] = (jnp.dot(x_ref[...], w_ref[0], preferred_element_type=jnp.float32)
                + b_ref[...]).astype(o_ref.dtype)


def _latent_kernel(mean_ref, logvar_ref, eps_ref, z_ref, kl_ref):
    mu = mean_ref[...]
    lv = logvar_ref[...]
    std = jnp.exp(0.5 * lv)
    z_ref[...] = mu + eps_ref[...] * std
    kl = -0.5 * jnp.sum(1.0 + lv - mu * mu - jnp.exp(lv))
    kl_ref[...] = jnp.reshape(kl, (1, 1))


def _ce_kernel(logits_ref, lbl_ref, o_ref, m_ref, l_ref, t_ref, *, seq_len, n_valid):
    """Shifted mean cross-entropy with fused target-logit pick; grid (row_tiles, vocab_tiles)."""
    ri = pl.program_id(0)
    vi = pl.program_id(1)

    @pl.when(vi == 0)
    def _():
        m_ref[...] = jnp.full(m_ref.shape, -jnp.inf, m_ref.dtype)
        l_ref[...] = jnp.zeros(l_ref.shape, l_ref.dtype)
        t_ref[...] = jnp.zeros(t_ref.shape, t_ref.dtype)

    x = logits_ref[...].astype(jnp.float32)                   # (tm, tv)
    tm, tv = x.shape
    m_new = jnp.maximum(m_ref[...], jnp.max(x, axis=-1, keepdims=True))
    alpha = jnp.exp(m_ref[...] - m_new)
    l_ref[...] = alpha * l_ref[...] + jnp.sum(jnp.exp(x - m_new), axis=-1, keepdims=True)
    m_ref[...] = m_new

    # Target logit: label column falls in exactly one vocab tile.
    cols = jax.lax.broadcasted_iota(jnp.int32, (tm, tv), 1) + vi * tv
    hit = cols == lbl_ref[...]
    t_ref[...] += jnp.sum(jnp.where(hit, x, 0.0), axis=-1, keepdims=True)

    @pl.when(vi == pl.num_programs(1) - 1)
    def _():
        lse = m_ref[...] + jnp.log(l_ref[...])
        rows = jax.lax.broadcasted_iota(jnp.int32, (tm, 1), 0) + ri * tm
        valid = ((rows % seq_len) != (seq_len - 1)).astype(jnp.float32)   # shifted-CE mask
        # TODO(synk): no ignore_index(-100)/padding masking, matching the reference with
        # labels that contain no -100 entries.
        o_ref[...] = (jnp.sum((lse - t_ref[...]) * valid) / n_valid).reshape(1, 1)


# ------------------------------------------------------------------ wrappers

def linear(x2d, w, b, gelu=False, out_dtype=jnp.float32):
    x2d = x2d.astype(jnp.bfloat16)                 # no-op: upstream kernels already emit bf16
    m, k = x2d.shape
    n = w.shape[1]
    tm = _tile(m, 1024, 8)                         # big M-tiles: stream the weight panel fewer times
    tn = _tile(n, 512, 128)
    tk = _tile(k, 1024, 128)                       # whole-K reduction for typical hidden sizes
    grid = (m // tm, n // tn, k // tk)
    return pl.pallas_call(
        functools.partial(_linear_kernel, gelu=gelu),
        out_shape=jax.ShapeDtypeStruct((m, n), out_dtype),
        grid_spec=pltpu.PrefetchScalarGridSpec(
            num_scalar_prefetch=0, grid=grid,
            in_specs=[pl.BlockSpec((tm, tk), lambda i, j, kk: (i, kk)),
                      pl.BlockSpec((tk, tn), lambda i, j, kk: (kk, j)),
                      pl.BlockSpec((1, tn), lambda i, j, kk: (0, j))],
            out_specs=pl.BlockSpec((tm, tn), lambda i, j, kk: (i, j)),
            scratch_shapes=[pltpu.VMEM((tm, tn), jnp.float32)]),
        compiler_params=pltpu.CompilerParams(
            dimension_semantics=("parallel", "parallel", "arbitrary"),
            vmem_limit_bytes=_BIG_VMEM),
    )(x2d, w.astype(jnp.bfloat16), b.reshape(1, n).astype(jnp.float32))


def linear_residual_layernorm(x2d, w, b, res2d, g, beta, eps=1e-12):
    x2d = x2d.astype(jnp.bfloat16)
    m, k = x2d.shape
    n = w.shape[1]
    tm = _tile(m, 512, 8)
    tk = _tile(k, 1024, 128)
    grid = (m // tm, k // tk)
    return pl.pallas_call(
        functools.partial(_linear_res_ln_kernel, eps=eps),
        out_shape=jax.ShapeDtypeStruct((m, n), jnp.bfloat16),
        grid_spec=pltpu.PrefetchScalarGridSpec(
            num_scalar_prefetch=0, grid=grid,
            in_specs=[pl.BlockSpec((tm, tk), lambda i, kk: (i, kk)),
                      pl.BlockSpec((tk, n), lambda i, kk: (kk, 0)),
                      pl.BlockSpec((1, n), lambda i, kk: (0, 0)),
                      pl.BlockSpec((tm, n), lambda i, kk: (i, 0)),
                      pl.BlockSpec((1, n), lambda i, kk: (0, 0)),
                      pl.BlockSpec((1, n), lambda i, kk: (0, 0))],
            out_specs=pl.BlockSpec((tm, n), lambda i, kk: (i, 0)),
            scratch_shapes=[pltpu.VMEM((tm, n), jnp.float32)]),
        compiler_params=pltpu.CompilerParams(
            dimension_semantics=("parallel", "arbitrary"),
            vmem_limit_bytes=_BIG_VMEM),
    )(x2d, w, b.reshape(1, n).astype(jnp.float32), res2d,
      g.reshape(1, n), beta.reshape(1, n))


def add_layernorm_bsh(a_bsh, b_any, g, beta, eps=1e-12):
    """LayerNorm(a + b); a: (B,S,H); b: (1,S,H) (bcast batch) or (B,1,H) (bcast seq). bf16 out."""
    bsz, s, h = a_bsh.shape
    ts = _tile(s, 512, 8)
    grid = (bsz, s // ts)
    b0, b1, _ = b_any.shape
    bt = ts if b1 != 1 else 1
    b_spec = pl.BlockSpec((1, bt, h),
                          lambda i, j: ((i if b0 != 1 else 0), (j if b1 != 1 else 0), 0))
    return pl.pallas_call(
        functools.partial(_bcast_add_ln_kernel, eps=eps),
        out_shape=jax.ShapeDtypeStruct((bsz, s, h), jnp.bfloat16),
        grid_spec=pltpu.PrefetchScalarGridSpec(
            num_scalar_prefetch=0, grid=grid,
            in_specs=[pl.BlockSpec((1, ts, h), lambda i, j: (i, j, 0)),
                      b_spec,
                      pl.BlockSpec((1, 1, h), lambda i, j: (0, 0, 0)),
                      pl.BlockSpec((1, 1, h), lambda i, j: (0, 0, 0))],
            out_specs=pl.BlockSpec((1, ts, h), lambda i, j: (i, j, 0))),
        compiler_params=pltpu.CompilerParams(
            dimension_semantics=("parallel", "parallel")),
    )(a_bsh, b_any, g.reshape(1, 1, h), beta.reshape(1, 1, h))


def attention(q, k, v, padmask, n_heads, causal):
    """q/k/v: (B*nh, S, hd) bf16; padmask: (B, S) (1 keep / 0 pad)."""
    bh, sq, hd = q.shape
    skv = k.shape[1]
    b = bh // n_heads
    gh = 1
    for cand in (4, 2, 1):               # group heads per grid step (amortize step overhead)
        if n_heads % cand == 0:
            gh = cand
            break
    steps_per_batch = n_heads // gh
    tkv = _tile(skv, 512, 128)
    n_kv = skv // tkv
    mask3 = padmask.reshape(b, 1, skv).astype(jnp.float32)
    return pl.pallas_call(
        functools.partial(_mha_kernel, causal=causal, kv_tile=tkv),
        out_shape=jax.ShapeDtypeStruct((bh, sq, hd), jnp.bfloat16),
        grid_spec=pltpu.PrefetchScalarGridSpec(
            num_scalar_prefetch=0, grid=(bh // gh, n_kv),
            in_specs=[pl.BlockSpec((gh, sq, hd), lambda i, j: (i, 0, 0)),
                      pl.BlockSpec((gh, tkv, hd), lambda i, j: (i, j, 0)),
                      pl.BlockSpec((gh, tkv, hd), lambda i, j: (i, j, 0)),
                      pl.BlockSpec((1, 1, tkv), lambda i, j: (i // steps_per_batch, 0, j))],
            out_specs=pl.BlockSpec((gh, sq, hd), lambda i, j: (i, 0, 0)),
            scratch_shapes=[pltpu.VMEM((gh, sq, 1), jnp.float32),
                            pltpu.VMEM((gh, sq, 1), jnp.float32),
                            pltpu.VMEM((gh, sq, hd), jnp.float32)]),
        compiler_params=pltpu.CompilerParams(
            dimension_semantics=("parallel", "arbitrary")),
    )(q, k, v, mask3)


def stacked_linear(x2d, w_stack, b_stack):
    """x2d: (B, L*H) bf16; w_stack: (L, H, H); b_stack: (L, H) -> (L, B, H) f32."""
    bsz = x2d.shape[0]
    n_layers, h, _ = w_stack.shape
    return pl.pallas_call(
        _stacked_linear_kernel,
        out_shape=jax.ShapeDtypeStruct((n_layers, bsz, h), jnp.float32),
        grid_spec=pltpu.PrefetchScalarGridSpec(
            num_scalar_prefetch=0, grid=(n_layers,),
            in_specs=[pl.BlockSpec((bsz, h), lambda l: (0, l)),
                      pl.BlockSpec((1, h, h), lambda l: (l, 0, 0)),
                      pl.BlockSpec((1, h), lambda l: (l, 0))],
            out_specs=pl.BlockSpec((1, bsz, h), lambda l: (l, 0, 0))),
        compiler_params=pltpu.CompilerParams(dimension_semantics=("parallel",)),
    )(x2d.astype(jnp.bfloat16), w_stack, b_stack)


def latent_sample_and_kl(mean, log_var, eps):
    b, h = mean.shape
    z, kl = pl.pallas_call(
        _latent_kernel,
        out_shape=(jax.ShapeDtypeStruct((b, h), jnp.float32),
                   jax.ShapeDtypeStruct((1, 1), jnp.float32)),
    )(mean, log_var, eps)
    return z, kl[0, 0]


def cross_entropy(logits2d, shift_labels2d, seq_len):
    """Shifted mean CE over the full (B*S, V) logits; last position of each seq masked out."""
    n, v = logits2d.shape
    bsz = n // seq_len
    n_valid = float(bsz * (seq_len - 1))
    tm = _tile(n, 512, 8)
    tv = _tile(v, 2048, 128)
    grid = (n // tm, v // tv)
    partial = pl.pallas_call(
        functools.partial(_ce_kernel, seq_len=seq_len, n_valid=n_valid),
        out_shape=jax.ShapeDtypeStruct((n // tm, 1), jnp.float32),
        grid_spec=pltpu.PrefetchScalarGridSpec(
            num_scalar_prefetch=0, grid=grid,
            in_specs=[pl.BlockSpec((tm, tv), lambda i, j: (i, j)),
                      pl.BlockSpec((tm, 1), lambda i, j: (i, 0))],
            out_specs=pl.BlockSpec((1, 1), lambda i, j: (i, 0)),
            scratch_shapes=[pltpu.VMEM((tm, 1), jnp.float32),
                            pltpu.VMEM((tm, 1), jnp.float32),
                            pltpu.VMEM((tm, 1), jnp.float32)]),
        compiler_params=pltpu.CompilerParams(
            dimension_semantics=("parallel", "arbitrary"),
            vmem_limit_bytes=_BIG_VMEM),
    )(logits2d, shift_labels2d.astype(jnp.int32))
    return jnp.sum(partial)            # tiny (row_tiles,1) reduction left to XLA


# ------------------------------------------------------------------ model glue

def self_attention_block(x, padmask, layer, n_heads, causal):
    b, s, h = x.shape
    hd = h // n_heads
    # Fused QKV projection (q columns pre-scaled by 1/sqrt(hd) at init), bf16 output.
    qkv = linear(x.reshape(-1, h), layer["self_qkv_w"], layer["self_qkv_b"],
                 out_dtype=jnp.bfloat16)                                   # (B*S, 3H)
    # TODO(synk): head split/merge transposes stay in XLA; reading heads in-kernel from the
    # (B*S, 3H) slab needs sub-128-lane blocks (head_dim < 128), which TPU tiling rejects.
    qkv = qkv.reshape(b, s, 3, n_heads, hd).transpose(2, 0, 3, 1, 4).reshape(3, b * n_heads, s, hd)
    q, k, v = qkv[0], qkv[1], qkv[2]
    ctx = attention(q, k, v, padmask, n_heads, causal=causal)              # (B*nh, S, hd) bf16
    ctx = ctx.reshape(b, n_heads, s, hd).transpose(0, 2, 1, 3).reshape(b * s, h)
    # Output projection fused with residual add + layernorm (bf16 out).
    out = linear_residual_layernorm(ctx, layer["self_o_w"], layer["self_o_b"],
                                    x.reshape(-1, h),
                                    layer["self_ln_g"], layer["self_ln_b"])
    return out.reshape(b, s, h)


def feed_forward(x, layer):
    b, s, h = x.shape
    inter = linear(x.reshape(-1, h), layer["inter_w"], layer["inter_b"],
                   gelu=True, out_dtype=jnp.bfloat16)
    out = linear_residual_layernorm(inter, layer["out_w"], layer["out_b"],
                                    x.reshape(-1, h),
                                    layer["out_ln_g"], layer["out_ln_b"])
    return out.reshape(b, s, h)


def bert_forward(params, input_ids, attention_mask, n_heads, causal=False, latent=None):
    b, s = input_ids.shape
    h = params["word_emb"].shape[1]
    emb = params["word_emb"][input_ids]                                    # (B,S,H) gather (JAX)
    pos = params["pos_emb"][:s][None, :, :]                                # (1,S,H), bcast in-kernel
    x = add_layernorm_bsh(emb, pos, params["emb_ln_g"], params["emb_ln_b"])

    cross_ctx = None
    if latent is not None:
        # Decoder cross-attention over the length-1 latent: softmax over one key == 1, so the
        # context is O_l(V_l(z)) per layer -- layer-invariant in z, hoisted out of the loop and
        # computed in two pallas_calls total (fused V over concatenated weights + stacked O).
        v_all = linear(latent, params["cross_v_w"], params["cross_v_b"],
                       out_dtype=jnp.bfloat16)                             # (B, L*H)
        cross_ctx = stacked_linear(v_all, params["cross_o_w"], params["cross_o_b"])  # (L,B,H)

    for li, layer in enumerate(params["layers"]):
        x = self_attention_block(x, attention_mask, layer, n_heads, causal)
        if cross_ctx is not None:
            # (B,H) latent context broadcast over the sequence inside the add+LN kernel.
            x = add_layernorm_bsh(x, cross_ctx[li][:, None, :],
                                  layer["cross_ln_g"], layer["cross_ln_b"])
        x = feed_forward(x, layer)
    return x                                                               # (B, S, H) bf16


def vae_forward(enc_p, dec_p, vae_p, input_ids, attention_mask, labels, eps, cfg):
    b, s = input_ids.shape
    h = cfg["hidden"]
    nh = cfg["n_heads"]
    vocab = cfg["vocab"]

    # ---- Encoder (BertGenerationEncoder + pooling linear on [CLS]) ----
    enc_hidden = bert_forward(enc_p, input_ids, attention_mask, nh, causal=False)
    pooled = linear(enc_hidden[:, 0, :], enc_p["pool_w"], enc_p["pool_b"],
                    out_dtype=jnp.bfloat16)                                    # (B, H)

    # ---- Latent: fused mean/log_var projection, reparameterize, KL ----
    ml = linear(pooled, vae_p["ml_w"], vae_p["ml_b"])                          # (B, 2H) f32
    mu, log_var = ml[:, :h], ml[:, h:]
    z, kl = latent_sample_and_kl(mu, log_var, eps)                             # (B,H), scalar

    # ---- Decoder (causal self-attn + simplified cross-attn on the length-1 latent) ----
    dec_hidden = bert_forward(dec_p, input_ids, attention_mask, nh,
                              causal=True, latent=z)
    logits = linear(dec_hidden.reshape(-1, h), dec_p["lm_w"], dec_p["lm_b"])   # (B*S, V) f32

    # ---- Shifted LM cross-entropy (shift + target-logit gather fused in-kernel) ----
    shift_labels = jnp.concatenate([labels[:, 1:], jnp.zeros((b, 1), labels.dtype)], axis=1)
    lm_loss = cross_entropy(logits, shift_labels.reshape(-1, 1), seq_len=s)

    total_loss = lm_loss + cfg["kld_weight"] * kl
    return total_loss, logits.reshape(b, s, vocab)


# ------------------------------------------------------------------ param init

class _KeyGen:
    def __init__(self, key):
        self._key = key

    def __call__(self):
        self._key, sub = jax.random.split(self._key)
        return sub


def _dense(kg, fan_in, fan_out):
    w = (jax.random.normal(kg(), (fan_in, fan_out)) * 0.02).astype(jnp.bfloat16)
    b = jnp.zeros((fan_out,), jnp.float32)
    return w, b


def _fused_qkv(kg, hidden, n_heads):
    scale = 1.0 / math.sqrt(hidden // n_heads)
    qw = jax.random.normal(kg(), (hidden, hidden)) * 0.02 * scale   # fold 1/sqrt(hd) into q
    kw = jax.random.normal(kg(), (hidden, hidden)) * 0.02
    vw = jax.random.normal(kg(), (hidden, hidden)) * 0.02
    w = jnp.concatenate([qw, kw, vw], axis=1).astype(jnp.bfloat16)
    b = jnp.zeros((3 * hidden,), jnp.float32)
    return w, b


def init_bert(kg, vocab, hidden, inter, n_layers, max_pos, n_heads,
              is_decoder=False, add_pooling=False, add_lm_head=False):
    p = {
        "word_emb": (jax.random.normal(kg(), (vocab, hidden)) * 0.02).astype(jnp.float32),
        "pos_emb": (jax.random.normal(kg(), (max_pos, hidden)) * 0.02).astype(jnp.float32),
        "emb_ln_g": jnp.ones((hidden,), jnp.float32),
        "emb_ln_b": jnp.zeros((hidden,), jnp.float32),
        "layers": [],
    }
    cvw, cvb, cow, cob = [], [], [], []
    for _ in range(n_layers):
        layer = {}
        layer["self_qkv_w"], layer["self_qkv_b"] = _fused_qkv(kg, hidden, n_heads)
        layer["self_o_w"], layer["self_o_b"] = _dense(kg, hidden, hidden)
        layer["self_ln_g"] = jnp.ones((hidden,), jnp.float32)
        layer["self_ln_b"] = jnp.zeros((hidden,), jnp.float32)
        if is_decoder:
            # Cross-attention over the length-1 latent only ever uses V and O projections
            # (softmax over a single key is 1 regardless of Q/K), so q/k params are omitted.
            vw, vb = _dense(kg, hidden, hidden)
            ow, ob = _dense(kg, hidden, hidden)
            cvw.append(vw); cvb.append(vb); cow.append(ow); cob.append(ob)
            layer["cross_ln_g"] = jnp.ones((hidden,), jnp.float32)
            layer["cross_ln_b"] = jnp.zeros((hidden,), jnp.float32)
        layer["inter_w"], layer["inter_b"] = _dense(kg, hidden, inter)
        layer["out_w"], layer["out_b"] = _dense(kg, inter, hidden)
        layer["out_ln_g"] = jnp.ones((hidden,), jnp.float32)
        layer["out_ln_b"] = jnp.zeros((hidden,), jnp.float32)
        p["layers"].append(layer)
    if is_decoder:
        p["cross_v_w"] = jnp.concatenate(cvw, axis=1)      # (H, L*H)
        p["cross_v_b"] = jnp.concatenate(cvb, axis=0)      # (L*H,)
        p["cross_o_w"] = jnp.stack(cow, axis=0)            # (L, H, H)
        p["cross_o_b"] = jnp.stack(cob, axis=0)            # (L, H)
    if add_pooling:
        p["pool_w"], p["pool_b"] = _dense(kg, hidden, hidden)
    if add_lm_head:
        p["lm_w"], p["lm_b"] = _dense(kg, hidden, vocab)
    return p


# ------------------------------------------------------------------ main

if __name__ == "__main__":
    # Small but lane-friendly config (hidden/vocab multiples of 128).
    cfg = dict(vocab=256, hidden=128, inter=256, n_heads=4, n_layers=2,
               max_pos=32, kld_weight=0.1)
    B, S = 2, 16

    kg = _KeyGen(jax.random.PRNGKey(0))

    enc_params = init_bert(kg, cfg["vocab"], cfg["hidden"], cfg["inter"],
                           cfg["n_layers"], cfg["max_pos"], cfg["n_heads"],
                           is_decoder=False, add_pooling=True)
    dec_params = init_bert(kg, cfg["vocab"], cfg["hidden"], cfg["inter"],
                           cfg["n_layers"], cfg["max_pos"], cfg["n_heads"],
                           is_decoder=True, add_lm_head=True)
    mean_w = jax.random.normal(kg(), (cfg["hidden"], cfg["hidden"])) * 0.02
    lv_w = jax.random.normal(kg(), (cfg["hidden"], cfg["hidden"])) * 0.02
    vae_params = {"ml_w": jnp.concatenate([mean_w, lv_w], axis=1).astype(jnp.bfloat16),
                  "ml_b": jnp.zeros((2 * cfg["hidden"],), jnp.float32)}

    input_ids = jax.random.randint(kg(), (B, S), 0, cfg["vocab"], dtype=jnp.int32)
    labels = jax.random.randint(kg(), (B, S), 0, cfg["vocab"], dtype=jnp.int32)
    attention_mask = jnp.ones((B, S), jnp.float32).at[1, 12:].set(0.0)
    eps = jax.random.normal(kg(), (B, cfg["hidden"]), jnp.float32)  # reparameterization noise

    total_loss, logits = vae_forward(enc_params, dec_params, vae_params,
                                     input_ids, attention_mask, labels, eps, cfg)
    jax.block_until_ready((total_loss, logits))

    assert logits.shape == (B, S, cfg["vocab"])
    assert total_loss.shape == ()
    assert bool(jnp.isfinite(total_loss))
    print("KERNEL_OK")
</pallas_src>

<mosaic_0001>
module attributes {stable_mosaic.version = 11 : i64} {
  func.func @_bcast_add_ln_kernel(%arg0: i32, %arg1: i32, %arg2: memref<1x16x128xf32, #tpu.memory_space<vmem>>, %arg3: memref<1x16x128xf32, #tpu.memory_space<vmem>>, %arg4: memref<1x1x128xf32, #tpu.memory_space<vmem>>, %arg5: memref<1x1x128xf32, #tpu.memory_space<vmem>>, %arg6: memref<1x16x128xbf16, #tpu.memory_space<vmem>>) attributes {dimension_semantics = [#tpu.dimension_semantics<parallel>, #tpu.dimension_semantics<parallel>], iteration_bounds = array<i64: 2, 1>, scalar_prefetch = 0 : i64, scratch_operands = 0 : i64, tpu.core_type = #tpu.core_type<tc>, window_params = [{transform_indices = @transform_0, window_bounds = array<i64: 1, 16, 128>}, {transform_indices = @transform_1, window_bounds = array<i64: 1, 16, 128>}, {pipeline_mode = #tpu.pipeline_mode<synchronous>, transform_indices = @transform_2, window_bounds = array<i64: 1, 1, 128>}, {pipeline_mode = #tpu.pipeline_mode<synchronous>, transform_indices = @transform_3, window_bounds = array<i64: 1, 1, 128>}, {transform_indices = @transform_4, window_bounds = array<i64: 1, 16, 128>}]} {
    %c0 = arith.constant 0 : index
    %c0_0 = arith.constant 0 : index
    %c0_1 = arith.constant 0 : index
    %0 = vector.load %arg2[%c0, %c0_0, %c0_1] : memref<1x16x128xf32, #tpu.memory_space<vmem>>, vector<1x16x128xf32>
    %c0_2 = arith.constant 0 : index
    %c0_3 = arith.constant 0 : index
    %c0_4 = arith.constant 0 : index
    %1 = vector.load %arg3[%c0_2, %c0_3, %c0_4] : memref<1x16x128xf32, #tpu.memory_space<vmem>>, vector<1x16x128xf32>
    %2 = arith.addf %0, %1 : vector<1x16x128xf32>
    %cst = arith.constant dense<0.000000e+00> : vector<1x16xf32>
    %3 = vector.multi_reduction <add>, %2, %cst [2] : vector<1x16x128xf32> to vector<1x16xf32>
    %4 = vector.shape_cast %3 : vector<1x16xf32> to vector<1x16x1xf32>
    %cst_5 = arith.constant 1.280000e+02 : f32
    %5 = vector.broadcast %cst_5 : f32 to vector<1x16x1xf32>
    %6 = arith.divf %4, %5 : vector<1x16x1xf32>
    %7 = vector.broadcast %6 : vector<1x16x1xf32> to vector<1x16x128xf32>
    %8 = arith.subf %2, %7 : vector<1x16x128xf32>
    %9 = arith.mulf %8, %8 : vector<1x16x128xf32>
    %cst_6 = arith.constant dense<0.000000e+00> : vector<1x16xf32>
    %10 = vector.multi_reduction <add>, %9, %cst_6 [2] : vector<1x16x128xf32> to vector<1x16xf32>
    %11 = vector.shape_cast %10 : vector<1x16xf32> to vector<1x16x1xf32>
    %cst_7 = arith.constant 1.280000e+02 : f32
    %12 = vector.broadcast %cst_7 : f32 to vector<1x16x1xf32>
    %13 = arith.divf %11, %12 : vector<1x16x1xf32>
    %14 = vector.broadcast %6 : vector<1x16x1xf32> to vector<1x16x128xf32>
    %15 = arith.subf %2, %14 : vector<1x16x128xf32>
    %cst_8 = arith.constant 9.99999996E-13 : f32
    %16 = vector.broadcast %cst_8 : f32 to vector<1x16x1xf32>
    %17 = arith.addf %13, %16 : vector<1x16x1xf32>
    %18 = math.rsqrt %17 : vector<1x16x1xf32>
    %19 = vector.broadcast %18 : vector<1x16x1xf32> to vector<1x16x128xf32>
    %20 = arith.mulf %15, %19 : vector<1x16x128xf32>
    %c0_9 = arith.constant 0 : index
    %c0_10 = arith.constant 0 : index
    %c0_11 = arith.constant 0 : index
    %21 = vector.load %arg4[%c0_9, %c0_10, %c0_11] : memref<1x1x128xf32, #tpu.memory_space<vmem>>, vector<1x1x128xf32>
    %22 = vector.broadcast %21 : vector<1x1x128xf32> to vector<1x16x128xf32>
    %23 = arith.mulf %20, %22 : vector<1x16x128xf32>
    %c0_12 = arith.constant 0 : index
    %c0_13 = arith.constant 0 : index
    %c0_14 = arith.constant 0 : index
    %24 = vector.load %arg5[%c0_12, %c0_13, %c0_14] : memref<1x1x128xf32, #tpu.memory_space<vmem>>, vector<1x1x128xf32>
    %25 = vector.broadcast %24 : vector<1x1x128xf32> to vector<1x16x128xf32>
    %26 = arith.addf %23, %25 : vector<1x16x128xf32>
    %27 = arith.truncf %26 : vector<1x16x128xf32> to vector<1x16x128xbf16>
    %c0_15 = arith.constant 0 : index
    %c0_16 = arith.constant 0 : index
    %c0_17 = arith.constant 0 : index
    %28 = vector.load %arg6[%c0_15, %c0_16, %c0_17] : memref<1x16x128xbf16, #tpu.memory_space<vmem>>, vector<1x16x128xbf16>
    tpu.vector_store %arg6[%c0_15, %c0_16, %c0_17], %27 {strides = array<i32>} : memref<1x16x128xbf16, #tpu.memory_space<vmem>>, vector<1x16x128xbf16>,
    return
  }
  func.func @transform_0(%arg0: i32, %arg1: i32) -> (i32, i32, i32) {
    %c0_i32 = arith.constant 0 : i32
    %c0_i32_0 = arith.constant 0 : i32
    return %arg0, %arg1, %c0_i32 : i32, i32, i32
  }
  func.func @transform_1(%arg0: i32, %arg1: i32) -> (i32, i32, i32) {
    %c0_i32 = arith.constant 0 : i32
    %c0_i32_0 = arith.constant 0 : i32
    %c0_i32_1 = arith.constant 0 : i32
    return %c0_i32, %arg1, %c0_i32_0 : i32, i32, i32
  }
  func.func @transform_2(%arg0: i32, %arg1: i32) -> (i32, i32, i32) {
    %c0_i32 = arith.constant 0 : i32
    %c0_i32_0 = arith.constant 0 : i32
    %c0_i32_1 = arith.constant 0 : i32
    %c0_i32_2 = arith.constant 0 : i32
    return %c0_i32, %c0_i32_0, %c0_i32_1 : i32, i32, i32
  }
  func.func @transform_3(%arg0: i32, %arg1: i32) -> (i32, i32, i32) {
    %c0_i32 = arith.constant 0 : i32
    %c0_i32_0 = arith.constant 0 : i32
    %c0_i32_1 = arith.constant 0 : i32
    %c0_i32_2 = arith.constant 0 : i32
    return %c0_i32, %c0_i32_0, %c0_i32_1 : i32, i32, i32
  }
  func.func @transform_4(%arg0: i32, %arg1: i32) -> (i32, i32, i32) {
    %c0_i32 = arith.constant 0 : i32
    %c0_i32_0 = arith.constant 0 : i32
    return %arg0, %arg1, %c0_i32 : i32, i32, i32
  }
}

</mosaic_0001>

<bundles_post_ra>
// kernel: tpu_custom_call.1
= control target key start
LH: loop header
LB: loop body
LE: loop exit
PB: predicated region body
PF: predicated region fallthrough
CT: control target
= control target key end

     0   :  { %s909_s0 = inlined_call_operand.hbm [shape: f32[2,16,128], index: 0, kind: input, shape index: {}]   ;;  %s910_s1 = inlined_call_operand.hbm [shape: f32[1,16,128], index: 1, kind: input, shape index: {}]   ;;  %s911_s2 = inlined_call_operand.vmem [shape: f32[1,1,128], index: 2, kind: input, shape index: {}]   ;;  %s912_s3 = inlined_call_operand.vmem [shape: f32[1,1,128], index: 3, kind: input, shape index: {}]   ;;  %s913_s4 = inlined_call_operand.hbm [shape: bf16[2,16,128], index: 4, kind: output, shape index: {}]  }
   0x1   :  { %917 = sst [smem:[#allocation11_spill]] %s910_s1 }
   0x2   :  { %9 = vsyncpa [#allocation3], 0 }
   0x3   :  { %11 = vsyncpa [#allocation3 + $0x1], 0 }
   0x4   :  { %12 = vsyncpa [#allocation6], 0 }
   0x5   :  { %13 = vsyncpa [#allocation4], 0 }
   0x6   :  { %15 = vsyncpa [#allocation4 + $0x1], 0  ;;  %s715_s15 = smov 0   ;;  %s717_s16 = smov 0  }
   0x7   :  { %s719_s17 = smov 0   ;;  %s721_s18 = smov 0  }
   0x8   :  { %s723_s19 = smov 0   ;;  %s725_s20 = smov 0  }
   0x9 LB: > { %s432_s21 = sadd.s32 4294967295, %s681_s20   ;;  %s433_s22 = sadd.s32 4294967294, %s681_s20   ;;  %s681_s20 = sphi %s725_s20, %s21_s20   ;;  %s677_s19 = sphi %s723_s19, %s937_s19   ;;  %s673_s18 = sphi %s721_s18, %s936_s18   ;;  %s669_s17 = sphi %s719_s17, %s935_s17   ;;  %s665_s16 = sphi %s717_s16, %s934_s16   ;;  %s661_s15 = sphi %s715_s15, %s933_s15  }
   0xa   : > { %p55_p0 = scmp.ne.s32.totalorder %s665_s16, %s661_s15  ;;  %p749_p1 = scmp.eq.s32.totalorder %s432_s21, 0 }
   0xb   : > { %p753_p2 = scmp.eq.s32.totalorder %s432_s21, 1  ;;  %p155_p3 = scmp.eq.s32.totalorder %s433_s22, 1 }
   0xc   : > { %p759_p4 = por %p749_p1, %p55_p0  ;;  %p434_p5 = scmp.ge.s32.totalorder %s681_s20, 1 }
   0xd   : > { %p764_p6 = por %p155_p3, %p55_p0  ;;  %p162_p7 = scmp.lt.s32.totalorder %s681_s20, 3 }
   0xe   : > { %s920_s25 = scalar_select %p759_p4, 1, 0 }
   0xf   : > { %s921_s26 = scalar_select %p764_p6, 1, 0 }
  0x10   : > { %p769_p8 = pnand %p434_p5, %p162_p7  ;;  %s683_s28 = smov [#allocation5]  }
  0x11   : > { %s177_s29 = sshll.u32 %s683_s28, 4  ;;  %s33_s5 = sadd.s32 1, %s677_s19  ;;  %s178_s29 = int_to_ptr.vmem [resolvable:$true] %s177_s29 }
  0x12   : > { %p470_p9 = pneg %p769_p8  ;;  %s554_s6 = scalar_lea.vmem %s178_s29, 256 }
  0x13   : > { %p555_p13 = scmp.ne.s32.totalorder %s178_s29, %s554_s6  ;;  %p562_p5 = scmp.lt.s32.totalorder %s178_s29, %s178_s29 }
  0x14   : > { %p778_p11 = pnand %p470_p9, %p749_p1  ;;  %p563_p7 = scmp.lt.s32.totalorder %s554_s6, %s554_s6 }
  0x16   : > { %p545_p12 = pneg %p778_p11  ;;  %p564_p6 = por %p563_p7, %p562_p5 }
  0x18   : > { %p557_p0 = pnand %p555_p13, %p545_p12 }
  0x1a   : > { %p558_p3 = pneg %p557_p0 }
  0x1c   : > { %p565_p4 = pnand %p564_p6, %p558_p3 }
  0x1e   : > { %568 = shalt.err (!%p565_p4)
}
  0x1f   : > { %s915_s7 = smov 128   ;;  %s916_s8 = smov 8  }
  0x20   : > { %s924_s1 = sld [smem:[#allocation11_spill]]  ;;  %p35_p4 = scmp.ge.s32.totalorder %s33_s5, 2 }
  0x21   : > { %s42_s11 = sadd.s32 1, %s669_s17  ;;  %p49_p6 = scmp.ne.s32.totalorder %s669_s17, %s665_s16 }
  0x22   : > { %p50_p9 = scmp.eq.s32.totalorder %s681_s20, 0  ;;  %s939_s5 = smov (%p35_p4, %s33_s5), 0 }
  0x23   : > { %p805_p13 = por %p753_p2, %p49_p6  ;;  %s37_s14 = ssub.s32 %s677_s19, %s939_s5 }
  0x24   : > { %p799_p12 = por %p50_p9, %p49_p6  ;;  %p483_p0 = scmp.lt.s32.totalorder %s681_s20, 2 }
  0x25   : > { %s197_s21 = sand.u32 1, %s669_s17  }
  0x26   : > { %473 = dma.hbm_to_vmem [thread:$0]  (!%p778_p11), %s924_s1, 256, %s178_s29, [#allocation6], %s915_s7, %s915_s7, %s916_s8  }
  0x27   : > { %p40_p11 = scmp.eq.s32.totalorder %s37_s14, 0  ;;  %s437_s22 = sshll.u32 %s197_s21, 4 }
  0x28   : > { %s453_s29 = sshll.u32 %s677_s19, 8  ;;  %s201_s10 = scalar_lea.vmem [#allocation2], %s437_s22 }
  0x29   : > { %s814_s28 = scalar_select %p40_p11, %s669_s17, %s42_s11  }
  0x2a   : > { %s209_s9 = scalar_lea.hbm %s909_s0, %s453_s29  ;;  %s210_s7 = sshll.u32 %s201_s10, 4  ;;  %s211_s7 = int_to_ptr.vmem [resolvable:$true] %s210_s7 }
  0x2b   : > { %p822_p2 = pnand %p483_p0, %p799_p12  ;;  %s198_s8 = scalar_lea.sflag [#allocation3], %s197_s21 }
  0x2c   : > { %s582_s14 = scalar_lea.vmem %s211_s7, 256  ;;  %s686_s11 = smov [#allocation2]  }
  0x2d   : > { %p571_p3 = pneg %p822_p2  ;;  %p583_p5 = scmp.ne.s32.totalorder %s211_s7, %s582_s14 }
  0x2e   : > { %s587_s1 = sshll.u32 %s686_s11, 4  ;;  %s588_s1 = int_to_ptr.vmem [resolvable:$false] %s587_s1 }
  0x2f   : > { %p585_p7 = pnand %p583_p5, %p571_p3  ;;  %s589_s29 = scalar_lea.vmem %s588_s1, 512 }
  0x30   : > { %p590_p6 = scmp.lt.s32.totalorder %s211_s7, %s588_s1  ;;  %p591_p9 = scmp.lt.s32.totalorder %s589_s29, %s582_s14 }
  0x31   : > { %p586_p4 = pneg %p585_p7 }
  0x32   : > { %p592_p11 = por %p591_p9, %p590_p6 }
  0x34   : > { %p593_p10 = pnand %p592_p11, %p586_p4 }
  0x36   : > { %596 = shalt.err (!%p593_p10)
}
  0x37   : > { %s928_s12 = smov 8   ;;  %s929_s22 = smov 128  }
  0x38   : > { %477 = dma.hbm_to_vmem [thread:$0]  (!%p822_p2), %s209_s9, 256, %s211_s7, %s198_s8, %s929_s22, %s929_s22, %s928_s12  }
  0x39   : > { %222 = sbr.rel (%p769_p8) target bundleno = 395 (0x18b), region = 36  ;;  %s836_s21 = sand.u32 (!%p769_p8), 1, %s665_s16  }
  0x3a   : > { %s441_s1 = sshll.u32 (!%p769_p8), %s836_s21, 4  ;;  %s225_s30 = scalar_lea.sflag (!%p769_p8), [#allocation3], %s836_s21 }
  0x3b   : > { %s228_s6 = scalar_lea.vmem (!%p769_p8), [#allocation2], %s441_s1  ;;  %p930_p12 = scmp.ne.s32.totalorder (!%p769_p8), %s920_s25, 0 }
  0x3e   : > { %648 = dma.done.wait (%p930_p12), %s225_s30, 256  }
  0x3f   : > { %650 = vsyncadd (%p930_p12), %s225_s30, 4294967040 }
  0x40   : > { %652 = dma.done.wait (%p749_p1), [#allocation6], 256  }
  0x41   : > { %654 = vsyncadd (%p749_p1), [#allocation6], 4294967040  ;;  %v260_v0 = vld [vmem:[%s228_s6] sm:$0xff]  ;;  %v261_v2 = vld [vmem:[%s228_s6 + $0x8] sm:$0xff]  ;;  %s443_s23 = sshll.u32 %s836_s21, 3  ;;  %s456_s9 = sshll.u32 %s673_s18, 7 }
  0x42   : > { %v262_v1 = vld [vmem:[#allocation5] sm:$0xff]  ;;  %v263_v4 = vld [vmem:[#allocation5 + $0x8] sm:$0xff]  ;;  %s256_s10 = scalar_lea.vmem [#allocation7], %s443_s23  ;;  %s859_s29 = scalar_lea.hbm %s913_s4, %s456_s9 }
  0x43   : > { %v264_v3 = vadd.f32 %v262_v1, %v260_v0  ;;  %v265_v5 = vadd.f32 %v263_v4, %v261_v2  ;;  %v444_v22 = vld [vmem:[%s911_s2] ss:$0 sm:$0xff]  ;;  %s333_s24 = sshll.u32 %s256_s10, 4  ;;  %s318_s12 = scalar_lea.sflag [#allocation4], %s836_s21  ;;  %s861_s24 = int_to_ptr.vmem [resolvable:$true] %s333_s24 }
  0x44   : > { %v445_v26 = vld [vmem:[%s912_s3] ss:$0 sm:$0xff]  ;;  %s597_s22 = scalar_lea.vmem %s861_s24, 128  ;;  %s687_s18 = smov [#allocation7]  }
  0x45   : > { %266 = vadd.xlane.f32.xlu0 %v264_v3  ;;  %p598_p1 = scmp.ne.s32.totalorder %s861_s24, %s597_s22  ;;  %s601_s1 = sshll.u32 %s687_s18, 4  ;;  %s602_s1 = int_to_ptr.vmem [resolvable:$false] %s601_s1 }
  0x46   : > { %s603_s30 = scalar_lea.vmem %s602_s1, 256  ;;  %p604_p0 = scmp.lt.s32.totalorder %s861_s24, %s602_s1 }
  0x47   : > { %p599_p8 = pnand %p598_p1, %p805_p13  ;;  %p605_p2 = scmp.lt.s32.totalorder %s603_s30, %s597_s22 }
  0x49   : > { %268 = vadd.xlane.f32.xlu0 %v265_v5  ;;  %p600_p10 = pneg %p599_p8  ;;  %p606_p3 = por %p605_p2, %p604_p0 }
  0x4b   : > { %p607_p5 = pnand %p606_p3, %p600_p10 }
  0xce   : > { %v267_v6 = vpop.xlane.xlu0 %266 }
  0xcf   : > { %v271_v7 = vmul.f32 0.0078125, %v267_v6 }
  0xd1   : > { %v273_v8 = vsub.f32 %v264_v3, %v271_v7 }
  0xd2   : > { %v269_v9 = vpop.xlane.xlu0 %268 }
  0xd3   : > { %v272_v10 = vmul.f32 0.0078125, %v269_v9  ;;  %v275_v11 = vmul.f32 %v273_v8, %v273_v8 }
  0xd5   : > { %v274_v12 = vsub.f32 %v265_v5, %v272_v10  ;;  %277 = vadd.xlane.f32.xlu1 %v275_v11 }
  0xd7   : > { %v276_v13 = vmul.f32 %v274_v12, %v274_v12 }
  0xd9   : > { %279 = vadd.xlane.f32.xlu1 %v276_v13 }
 0x15e   : > { %v278_v14 = vpop.xlane.xlu1 %277 }
 0x15f   : > { %v281_v15 = vmul.f32 0.0078125, %v278_v14 }
 0x161   : > { %v283_v16 = vadd.f32 1e-12, %v281_v15 }
 0x162   : > { %v280_v17 = vpop.xlane.xlu1 %279 }
 0x163   : > { %539 = vrsqrt.f32 %v283_v16  ;;  %v282_v18 = vmul.f32 0.0078125, %v280_v17 }
 0x165   : > { %v284_v19 = vadd.f32 1e-12, %v282_v18 }
 0x167   : > { %541 = vrsqrt.f32 %v284_v19 }
 0x170   : > { %v540_v20 = vpop.eup %539 }
 0x171   : > { %v287_v21 = vmul.f32 %v540_v20, %v273_v8 }
 0x173   : > { %v296_v24 = vmul.f32 %v444_v22, %v287_v21 }
 0x174   : > { %v542_v23 = vpop.eup %541 }
 0x175   : > { %v288_v25 = vmul.f32 %v542_v23, %v274_v12  ;;  %v305_v28 = vadd.f32 %v445_v26, %v296_v24 }
 0x177   : > { %v297_v27 = vmul.f32 %v444_v22, %v288_v25 }
 0x179   : > { %v306_v29 = vadd.f32 %v445_v26, %v297_v27 }
 0x17b   : > { %v460_v30 = vpack.c.bf16 %v306_v29, %v305_v28 }
 0x17d   : > { %461 = vst [vmem:[%s256_s10] sm:$0xff] %v460_v30  }
 0x17e   : > { %610 = shalt.err (!%p607_p5)
}
 0x17f   : > { %s611_s6 = scalar_lea.hbm %s859_s29, 128  ;;  %s615_s27 = scalar_lea.hbm %s913_s4, 256 }
 0x180   : > { %p612_p7 = scmp.ne.s32.totalorder %s859_s29, %s611_s6  ;;  %p616_p9 = scmp.lt.s32.totalorder %s859_s29, %s913_s4 }
 0x181   : > { %p617_p11 = scmp.lt.s32.totalorder %s615_s27, %s611_s6 }
 0x182   : > { %p613_p4 = pnand %p612_p7, %p805_p13 }
 0x183   : > { %p618_p12 = por %p617_p11, %p616_p9 }
 0x184   : > { %p614_p6 = pneg %p613_p4 }
 0x186   : > { %p619_p1 = pnand %p618_p12, %p614_p6 }
 0x188   : > { %622 = shalt.err (!%p619_p1)
}
 0x189   : > { %s688_s9 = smov 64   ;;  %s689_s10 = smov 4  }
 0x18a   : > { %468 = dma.vmem_to_hbm [thread:$0]  (%p805_p13), %s861_s24, 128, %s859_s29, %s318_s12, %s688_s9, %s688_s9, %s689_s10  }
 0x18b PF: > { %s348_s14 = sand.u32 1, %s661_s15   ;;  %p931_p8 = scmp.ne.s32.totalorder %s921_s26, 0 }
 0x18c   : > { %p932_p10 = scmp.ge.s32.totalorder %s681_s20, 2  ;;  %s349_s11 = scalar_lea.sflag [#allocation4], %s348_s14 }
 0x18e   : > { %p479_p0 = pnand %p932_p10, %p931_p8 }
 0x190   : > { %p480_p2 = pneg %p479_p0 }
 0x192   : > { %656 = dma.done.wait (%p480_p2), %s349_s11, 128  }
 0x193   : > { %658 = vsyncadd (%p480_p2), %s349_s11, 4294967168  ;;  %s21_s20 = sadd.s32 1, %s681_s20   ;;  %s933_s15 = smov %s665_s16 }
 0x194   : > { %p18_p3 = scmp.ge.s32.totalorder %s21_s20, 4   ;;  %s934_s16 = smov %s669_s17 }
 0x195   : > { %s935_s17 = smov %s814_s28  ;;  %s936_s18 = smov %s677_s19 }
 0x196   : > { %s937_s19 = smov %s939_s5  ;;  %20 = sbr.rel (!%p18_p3) target bundleno = 9 (0x9), region = 86 }
 0x19b   :  { %354 = vsyncpa [#allocation3], 1 }
 0x19c   :  { %356 = vsyncpa [#allocation3 + $0x1], 1 }
 0x19d   :  { %357 = vsyncpa [#allocation6], 1 }
 0x19e   :  { %358 = vsyncpa [#allocation4], 1 }
 0x19f   :  { %360 = vsyncpa [#allocation4 + $0x1], 1 }

</bundles_post_ra>
